<compile_context>
chip_gen: v6e
topology: v6e:2x2x1
jax: 0.10.0
libtpu: 0.0.40
codegen_flags: <defaults>
</compile_context>

<pallas_src>
import functools

import jax
import jax.numpy as jnp
from jax.experimental import pallas as pl
from jax.experimental.pallas import tpu as pltpu


def _aspp_kernel(dilations, width, x_ref, wb_ref, bb_ref, wp_ref, bf_ref, o_ref):
    # x_ref:  (C_in, TN)      one batch element; TN flattened (h,w) positions on lanes
    # wb_ref: (3*D, O, C_in)  BN-folded branch conv taps (bf16), tap order (-d, 0, +d)
    # bb_ref: (D, O, 1)       BN-folded branch biases (f32)
    # wp_ref: (D, O, O)       BN-folded 1x1 projection, split per branch (bf16)
    # bf_ref: (O, 1)          BN-folded projection bias (f32)
    # o_ref:  (O, TN)         dense (un-padded) output tile
    x = x_ref[...]
    c_in, tn = x.shape

    # Column position of every lane; the tile is a multiple of `width`, so the local
    # lane index mod width equals the global column index.
    pos = jax.lax.broadcasted_iota(jnp.int32, (1, tn), 1) % width

    # One shifted copy of x per distinct tap offset. pltpu.roll rides the XLU; its
    # wrap-around lanes are killed by the same mask that implements conv zero-padding.
    shifted = {0: x.astype(jnp.bfloat16)}
    for d in dilations:
        for s in (-d, d):
            if s in shifted:
                continue
            xs = pltpu.roll(x, shift=(-s) % tn, axis=1)
            valid = jnp.logical_and(pos + s >= 0, pos + s < width)
            shifted[s] = jnp.where(valid, xs, jnp.zeros_like(xs)).astype(jnp.bfloat16)

    acc = None
    for di, d in enumerate(dilations):
        # Dilated 1x3 conv (+ folded BN) as three tap matmuls -- no structural zeros.
        y = (jnp.dot(wb_ref[3 * di + 0], shifted[-d], preferred_element_type=jnp.float32)
             + jnp.dot(wb_ref[3 * di + 1], shifted[0], preferred_element_type=jnp.float32)
             + jnp.dot(wb_ref[3 * di + 2], shifted[d], preferred_element_type=jnp.float32)
             + bb_ref[di])
        y = jnp.maximum(y, 0.0).astype(jnp.bfloat16)            # ReLU, branch output
        # 1x1 projection (+ folded final BN), split over the per-branch blocks of z.
        p = jnp.dot(wp_ref[di], y, preferred_element_type=jnp.float32)
        acc = p if acc is None else acc + p

    # TODO(synk): Dropout2d(0.2) is identity in eval mode; train-mode per-(b, c)
    # channel dropout is not implemented.
    o_ref[...] = (acc + bf_ref[...]).astype(o_ref.dtype)


def fold_aspp_params(params, dilations=(1, 3, 5, 7), eps=1e-5):
    """Fold inference-mode BatchNorms into the conv weights and pack for the kernel.

    Call once per parameter set (hoisted out of the per-call path)."""
    assert 0 not in dilations, "global-pool branch (dilation 0) not implemented here"
    n_dil = len(dilations)

    wb_taps, bb_rows = [], []
    for d in dilations:
        wd, gamma, beta, mu, var = params[f"branch_{d}"]
        sc = gamma / jnp.sqrt(var + eps)                              # (O,)
        wf = wd[:, :, 0, :].astype(jnp.float32) * sc[:, None, None]   # (O, C, 3)
        for k in range(3):                                            # taps: -d, 0, +d
            wb_taps.append(wf[:, :, k])
        bb_rows.append((beta - mu * sc).astype(jnp.float32))
    wb = jnp.stack(wb_taps).astype(jnp.bfloat16)                      # (3*D, O, C)
    bb = jnp.stack(bb_rows)[:, :, None].astype(jnp.float32)           # (D, O, 1)

    wp, gf, betaf, muf, varf = params["proj"]
    out_ch = wp.shape[0]
    sf = gf / jnp.sqrt(varf + eps)
    wpf = wp[:, :, 0, 0].astype(jnp.float32) * sf[:, None]            # (O, D*O)
    wp_s = jnp.stack([wpf[:, i * out_ch:(i + 1) * out_ch] for i in range(n_dil)])
    wp_s = wp_s.astype(jnp.bfloat16)                                  # (D, O, O)
    bf = (betaf - muf * sf).astype(jnp.float32)[:, None]              # (O, 1)

    return {"wb": wb, "bb": bb, "wp": wp_s, "bf": bf, "dilations": tuple(dilations)}


def _tile_vmem_bytes(tn, c_in, out_ch, n_dil, x_itemsize):
    io = 2 * c_in * tn * x_itemsize + 2 * out_ch * tn * 4      # double-buffered x / out
    live = (2 * n_dil + 1) * c_in * tn * 2                     # bf16 shifted copies
    live += out_ch * tn * (4 + 2 + 4)                          # y (f32 + bf16) + proj acc
    return io + live


def _pick_row_tile(hw, width, c_in, out_ch, n_dil, bsz, x_itemsize,
                   budget_bytes=24 * 1024 * 1024):
    """Largest spatial tile dividing H*W, multiple of W (conv rows never straddle a
    tile) and 128-lane aligned, fitting the VMEM budget; prefers >= 2 grid steps."""
    cands = [t for t in range(width, hw + 1, width)
             if hw % t == 0 and (t % 128 == 0 or t == hw)]
    cands.sort(reverse=True)
    fitting = [t for t in cands
               if _tile_vmem_bytes(t, c_in, out_ch, n_dil, x_itemsize) <= budget_bytes]
    pool = fitting if fitting else [cands[-1]]
    if bsz * (hw // pool[0]) < 2:                              # keep both v7x TCs busy
        multi = [t for t in pool if hw // t >= 2]
        if multi:
            return multi[0]
    return pool[0]


def aspp_forward(x, folded, row_tile=None):
    """x: (B, C_in, H, W) NCHW. Returns (B, out_ch, H, W) (eval-mode forward)."""
    dilations = folded["dilations"]
    bsz, c_in, h, width = x.shape
    out_ch = folded["bf"].shape[0]
    n_dil = len(dilations)
    hw = h * width

    tn = row_tile if row_tile is not None else _pick_row_tile(
        hw, width, c_in, out_ch, n_dil, bsz, x.dtype.itemsize)
    assert hw % tn == 0 and tn % width == 0 and (tn % 128 == 0 or tn == hw), tn

    # Weights are small (bf16, no structural zeros); Pallas double-buffers them, which
    # is accounted for in the VMEM estimate used for the scoped-VMEM limit below.
    w_bytes = sum(int(folded[k].size) * folded[k].dtype.itemsize
                  for k in ("wb", "bb", "wp", "bf"))
    est = _tile_vmem_bytes(tn, c_in, out_ch, n_dil, x.dtype.itemsize) + 2 * w_bytes
    vmem_limit = int(max(32 * 1024 * 1024, min(2 * est, 56 * 1024 * 1024)))

    x3 = x.reshape(bsz, c_in, hw)          # free: NCHW is already channel-major

    out = pl.pallas_call(
        functools.partial(_aspp_kernel, tuple(dilations), width),
        out_shape=jax.ShapeDtypeStruct((bsz, out_ch, hw), jnp.float32),
        grid=(bsz, hw // tn),
        in_specs=[
            pl.BlockSpec((None, c_in, tn), lambda b, i: (b, 0, i)),
            pl.BlockSpec(folded["wb"].shape, lambda b, i: (0, 0, 0)),
            pl.BlockSpec(folded["bb"].shape, lambda b, i: (0, 0, 0)),
            pl.BlockSpec(folded["wp"].shape, lambda b, i: (0, 0, 0)),
            pl.BlockSpec(folded["bf"].shape, lambda b, i: (0, 0)),
        ],
        out_specs=pl.BlockSpec((None, out_ch, tn), lambda b, i: (b, 0, i)),
        compiler_params=pltpu.CompilerParams(
            dimension_semantics=("parallel", "parallel"),
            vmem_limit_bytes=vmem_limit,
        ),
    )(x3, folded["wb"], folded["bb"], folded["wp"], folded["bf"])

    return out.reshape(bsz, out_ch, h, width)


def _reference(x, params, dilations, eps=1e-5):
    outs = []
    for d in dilations:
        wd, gamma, beta, mu, var = params[f"branch_{d}"]
        y = jax.lax.conv_general_dilated(
            x, wd, window_strides=(1, 1), padding=((0, 0), (d, d)),
            rhs_dilation=(1, d), dimension_numbers=("NCHW", "OIHW", "NCHW"),
            precision=jax.lax.Precision.HIGHEST)
        y = (y - mu[None, :, None, None]) / jnp.sqrt(var + eps)[None, :, None, None] \
            * gamma[None, :, None, None] + beta[None, :, None, None]
        outs.append(jnp.maximum(y, 0.0))
    z = jnp.concatenate(outs, axis=1)
    wp, gf, betaf, muf, varf = params["proj"]
    y = jax.lax.conv_general_dilated(
        z, wp, window_strides=(1, 1), padding=((0, 0), (0, 0)),
        dimension_numbers=("NCHW", "OIHW", "NCHW"),
        precision=jax.lax.Precision.HIGHEST)
    y = (y - muf[None, :, None, None]) / jnp.sqrt(varf + eps)[None, :, None, None] \
        * gf[None, :, None, None] + betaf[None, :, None, None]
    return y  # Dropout2d is identity in eval mode


if __name__ == "__main__":
    in_ch, out_ch = 4, 8
    bsz, h, w = 2, 16, 16
    dilations = (1, 3, 5, 7)

    keys = iter(jax.random.split(jax.random.PRNGKey(0), 32))
    params = {}
    for d in dilations:
        params[f"branch_{d}"] = (
            0.1 * jax.random.normal(next(keys), (out_ch, in_ch, 1, 3), jnp.float32),  # conv W
            1.0 + 0.1 * jax.random.normal(next(keys), (out_ch,), jnp.float32),        # BN gamma
            0.1 * jax.random.normal(next(keys), (out_ch,), jnp.float32),              # BN beta
            0.1 * jax.random.normal(next(keys), (out_ch,), jnp.float32),              # BN running_mean
            jax.random.uniform(next(keys), (out_ch,), jnp.float32, 0.5, 1.5),         # BN running_var
        )
    params["proj"] = (
        0.1 * jax.random.normal(next(keys), (out_ch, out_ch * len(dilations), 1, 1), jnp.float32),
        1.0 + 0.1 * jax.random.normal(next(keys), (out_ch,), jnp.float32),
        0.1 * jax.random.normal(next(keys), (out_ch,), jnp.float32),
        0.1 * jax.random.normal(next(keys), (out_ch,), jnp.float32),
        jax.random.uniform(next(keys), (out_ch,), jnp.float32, 0.5, 1.5),
    )
    x = jax.random.normal(next(keys), (bsz, in_ch, h, w), jnp.float32)

    folded = fold_aspp_params(params, dilations)       # hoisted: once per parameter set
    out = aspp_forward(x, folded)                      # auto tile -> tn=256, grid=(2, 1)
    out = jax.block_until_ready(out)

    ref = _reference(x, params, dilations)
    assert out.shape == (bsz, out_ch, h, w), out.shape
    max_err = float(jnp.max(jnp.abs(out - ref)))
    assert jnp.allclose(out, ref, atol=2e-2, rtol=2e-2), max_err  # bf16 MXU operands

    print("KERNEL_OK")
</pallas_src>

<mosaic_0001>
module attributes {stable_mosaic.version = 11 : i64} {
  func.func @_aspp_kernel(%arg0: i32, %arg1: i32, %arg2: memref<1x4x256xf32, #tpu.memory_space<vmem>>, %arg3: memref<12x8x4xbf16, #tpu.memory_space<vmem>>, %arg4: memref<4x8x1xf32, #tpu.memory_space<vmem>>, %arg5: memref<4x8x8xbf16, #tpu.memory_space<vmem>>, %arg6: memref<8x1xf32, #tpu.memory_space<vmem>>, %arg7: memref<1x8x256xf32, #tpu.memory_space<vmem>>) attributes {dimension_semantics = [#tpu.dimension_semantics<parallel>, #tpu.dimension_semantics<parallel>], iteration_bounds = array<i64: 2, 1>, scalar_prefetch = 0 : i64, scratch_operands = 0 : i64, tpu.core_type = #tpu.core_type<tc>, window_params = [{transform_indices = @transform_0, window_bounds = array<i64: 1, 4, 256>}, {pipeline_mode = #tpu.pipeline_mode<synchronous>, transform_indices = @transform_1, window_bounds = array<i64: 12, 8, 4>}, {pipeline_mode = #tpu.pipeline_mode<synchronous>, transform_indices = @transform_2, window_bounds = array<i64: 4, 8, 1>}, {pipeline_mode = #tpu.pipeline_mode<synchronous>, transform_indices = @transform_3, window_bounds = array<i64: 4, 8, 8>}, {pipeline_mode = #tpu.pipeline_mode<synchronous>, transform_indices = @transform_4, window_bounds = array<i64: 8, 1>}, {transform_indices = @transform_5, window_bounds = array<i64: 1, 8, 256>}]} {
    %c0 = arith.constant 0 : index
    %c0_0 = arith.constant 0 : index
    %c0_1 = arith.constant 0 : index
    %0 = vector.load %arg2[%c0, %c0_0, %c0_1] : memref<1x4x256xf32, #tpu.memory_space<vmem>>, vector<1x4x256xf32>
    %1 = vector.shape_cast %0 : vector<1x4x256xf32> to vector<4x256xf32>
    %2 = tpu.iota {dimensions = array<i32: 1>} : vector<1x256xi32>
    %c16_i32 = arith.constant 16 : i32
    %c0_i32 = arith.constant 0 : i32
    %3 = arith.cmpi eq, %c16_i32, %c0_i32 : i32
    %c1_i32 = arith.constant 1 : i32
    %4 = arith.select %3, %c1_i32, %c16_i32 : i32
    %5 = vector.broadcast %4 : i32 to vector<1x256xi32>
    %6 = arith.remsi %2, %5 : vector<1x256xi32>
    %c0_i32_2 = arith.constant 0 : i32
    %7 = vector.broadcast %c0_i32_2 : i32 to vector<1x256xi32>
    %8 = arith.cmpi ne, %6, %7 : vector<1x256xi32>
    %c0_i32_3 = arith.constant 0 : i32
    %9 = vector.broadcast %c0_i32_3 : i32 to vector<1x256xi32>
    %10 = arith.cmpi slt, %6, %9 : vector<1x256xi32>
    %c0_i32_4 = arith.constant 0 : i32
    %11 = arith.cmpi slt, %4, %c0_i32_4 : i32
    %12 = vector.broadcast %11 : i1 to vector<1x256xi1>
    %13 = vector.broadcast %12 : vector<1x256xi1> to vector<1x256xi1>
    %14 = arith.xori %10, %13 : vector<1x256xi1>
    %15 = arith.andi %14, %8 : vector<1x256xi1>
    %16 = vector.broadcast %4 : i32 to vector<1x256xi32>
    %17 = arith.addi %6, %16 : vector<1x256xi32>
    %18 = arith.select %15, %17, %6 : vector<1x256xi1>, vector<1x256xi32>
    %19 = arith.truncf %1 : vector<4x256xf32> to vector<4x256xbf16>
    %c1_i32_5 = arith.constant 1 : i32
    %20 = tpu.dynamic_rotate %1 by %c1_i32_5 dim 1 : vector<4x256xf32>, i32 -> vector<4x256xf32>
    %c-1_i32 = arith.constant -1 : i32
    %21 = vector.broadcast %c-1_i32 : i32 to vector<1x256xi32>
    %22 = arith.addi %18, %21 : vector<1x256xi32>
    %c0_i32_6 = arith.constant 0 : i32
    %23 = vector.broadcast %c0_i32_6 : i32 to vector<1x256xi32>
    %24 = arith.cmpi sge, %22, %23 : vector<1x256xi32>
    %c-1_i32_7 = arith.constant -1 : i32
    %25 = vector.broadcast %c-1_i32_7 : i32 to vector<1x256xi32>
    %26 = arith.addi %18, %25 : vector<1x256xi32>
    %c16_i32_8 = arith.constant 16 : i32
    %27 = vector.broadcast %c16_i32_8 : i32 to vector<1x256xi32>
    %28 = arith.cmpi slt, %26, %27 : vector<1x256xi32>
    %29 = arith.andi %24, %28 : vector<1x256xi1>
    %cst = arith.constant 0.000000e+00 : f32
    %30 = vector.broadcast %cst : f32 to vector<4x256xf32>
    %31 = vector.shape_cast %29 : vector<1x256xi1> to vector<1x256xi1>
    %32 = vector.broadcast %31 : vector<1x256xi1> to vector<4x256xi1>
    %33 = arith.select %32, %20, %30 : vector<4x256xi1>, vector<4x256xf32>
    %34 = arith.truncf %33 : vector<4x256xf32> to vector<4x256xbf16>
    %c255_i32 = arith.constant 255 : i32
    %35 = tpu.dynamic_rotate %1 by %c255_i32 dim 1 : vector<4x256xf32>, i32 -> vector<4x256xf32>
    %c1_i32_9 = arith.constant 1 : i32
    %36 = vector.broadcast %c1_i32_9 : i32 to vector<1x256xi32>
    %37 = arith.addi %18, %36 : vector<1x256xi32>
    %c0_i32_10 = arith.constant 0 : i32
    %38 = vector.broadcast %c0_i32_10 : i32 to vector<1x256xi32>
    %39 = arith.cmpi sge, %37, %38 : vector<1x256xi32>
    %c1_i32_11 = arith.constant 1 : i32
    %40 = vector.broadcast %c1_i32_11 : i32 to vector<1x256xi32>
    %41 = arith.addi %18, %40 : vector<1x256xi32>
    %c16_i32_12 = arith.constant 16 : i32
    %42 = vector.broadcast %c16_i32_12 : i32 to vector<1x256xi32>
    %43 = arith.cmpi slt, %41, %42 : vector<1x256xi32>
    %44 = arith.andi %39, %43 : vector<1x256xi1>
    %cst_13 = arith.constant 0.000000e+00 : f32
    %45 = vector.broadcast %cst_13 : f32 to vector<4x256xf32>
    %46 = vector.shape_cast %44 : vector<1x256xi1> to vector<1x256xi1>
    %47 = vector.broadcast %46 : vector<1x256xi1> to vector<4x256xi1>
    %48 = arith.select %47, %35, %45 : vector<4x256xi1>, vector<4x256xf32>
    %49 = arith.truncf %48 : vector<4x256xf32> to vector<4x256xbf16>
    %c3_i32 = arith.constant 3 : i32
    %50 = tpu.dynamic_rotate %1 by %c3_i32 dim 1 : vector<4x256xf32>, i32 -> vector<4x256xf32>
    %c-3_i32 = arith.constant -3 : i32
    %51 = vector.broadcast %c-3_i32 : i32 to vector<1x256xi32>
    %52 = arith.addi %18, %51 : vector<1x256xi32>
    %c0_i32_14 = arith.constant 0 : i32
    %53 = vector.broadcast %c0_i32_14 : i32 to vector<1x256xi32>
    %54 = arith.cmpi sge, %52, %53 : vector<1x256xi32>
    %c-3_i32_15 = arith.constant -3 : i32
    %55 = vector.broadcast %c-3_i32_15 : i32 to vector<1x256xi32>
    %56 = arith.addi %18, %55 : vector<1x256xi32>
    %c16_i32_16 = arith.constant 16 : i32
    %57 = vector.broadcast %c16_i32_16 : i32 to vector<1x256xi32>
    %58 = arith.cmpi slt, %56, %57 : vector<1x256xi32>
    %59 = arith.andi %54, %58 : vector<1x256xi1>
    %cst_17 = arith.constant 0.000000e+00 : f32
    %60 = vector.broadcast %cst_17 : f32 to vector<4x256xf32>
    %61 = vector.shape_cast %59 : vector<1x256xi1> to vector<1x256xi1>
    %62 = vector.broadcast %61 : vector<1x256xi1> to vector<4x256xi1>
    %63 = arith.select %62, %50, %60 : vector<4x256xi1>, vector<4x256xf32>
    %64 = arith.truncf %63 : vector<4x256xf32> to vector<4x256xbf16>
    %c253_i32 = arith.constant 253 : i32
    %65 = tpu.dynamic_rotate %1 by %c253_i32 dim 1 : vector<4x256xf32>, i32 -> vector<4x256xf32>
    %c3_i32_18 = arith.constant 3 : i32
    %66 = vector.broadcast %c3_i32_18 : i32 to vector<1x256xi32>
    %67 = arith.addi %18, %66 : vector<1x256xi32>
    %c0_i32_19 = arith.constant 0 : i32
    %68 = vector.broadcast %c0_i32_19 : i32 to vector<1x256xi32>
    %69 = arith.cmpi sge, %67, %68 : vector<1x256xi32>
    %c3_i32_20 = arith.constant 3 : i32
    %70 = vector.broadcast %c3_i32_20 : i32 to vector<1x256xi32>
    %71 = arith.addi %18, %70 : vector<1x256xi32>
    %c16_i32_21 = arith.constant 16 : i32
    %72 = vector.broadcast %c16_i32_21 : i32 to vector<1x256xi32>
    %73 = arith.cmpi slt, %71, %72 : vector<1x256xi32>
    %74 = arith.andi %69, %73 : vector<1x256xi1>
    %cst_22 = arith.constant 0.000000e+00 : f32
    %75 = vector.broadcast %cst_22 : f32 to vector<4x256xf32>
    %76 = vector.shape_cast %74 : vector<1x256xi1> to vector<1x256xi1>
    %77 = vector.broadcast %76 : vector<1x256xi1> to vector<4x256xi1>
    %78 = arith.select %77, %65, %75 : vector<4x256xi1>, vector<4x256xf32>
    %79 = arith.truncf %78 : vector<4x256xf32> to vector<4x256xbf16>
    %c5_i32 = arith.constant 5 : i32
    %80 = tpu.dynamic_rotate %1 by %c5_i32 dim 1 : vector<4x256xf32>, i32 -> vector<4x256xf32>
    %c-5_i32 = arith.constant -5 : i32
    %81 = vector.broadcast %c-5_i32 : i32 to vector<1x256xi32>
    %82 = arith.addi %18, %81 : vector<1x256xi32>
    %c0_i32_23 = arith.constant 0 : i32
    %83 = vector.broadcast %c0_i32_23 : i32 to vector<1x256xi32>
    %84 = arith.cmpi sge, %82, %83 : vector<1x256xi32>
    %c-5_i32_24 = arith.constant -5 : i32
    %85 = vector.broadcast %c-5_i32_24 : i32 to vector<1x256xi32>
    %86 = arith.addi %18, %85 : vector<1x256xi32>
    %c16_i32_25 = arith.constant 16 : i32
    %87 = vector.broadcast %c16_i32_25 : i32 to vector<1x256xi32>
    %88 = arith.cmpi slt, %86, %87 : vector<1x256xi32>
    %89 = arith.andi %84, %88 : vector<1x256xi1>
    %cst_26 = arith.constant 0.000000e+00 : f32
    %90 = vector.broadcast %cst_26 : f32 to vector<4x256xf32>
    %91 = vector.shape_cast %89 : vector<1x256xi1> to vector<1x256xi1>
    %92 = vector.broadcast %91 : vector<1x256xi1> to vector<4x256xi1>
    %93 = arith.select %92, %80, %90 : vector<4x256xi1>, vector<4x256xf32>
    %94 = arith.truncf %93 : vector<4x256xf32> to vector<4x256xbf16>
    %c251_i32 = arith.constant 251 : i32
    %95 = tpu.dynamic_rotate %1 by %c251_i32 dim 1 : vector<4x256xf32>, i32 -> vector<4x256xf32>
    %c5_i32_27 = arith.constant 5 : i32
    %96 = vector.broadcast %c5_i32_27 : i32 to vector<1x256xi32>
    %97 = arith.addi %18, %96 : vector<1x256xi32>
    %c0_i32_28 = arith.constant 0 : i32
    %98 = vector.broadcast %c0_i32_28 : i32 to vector<1x256xi32>
    %99 = arith.cmpi sge, %97, %98 : vector<1x256xi32>
    %c5_i32_29 = arith.constant 5 : i32
    %100 = vector.broadcast %c5_i32_29 : i32 to vector<1x256xi32>
    %101 = arith.addi %18, %100 : vector<1x256xi32>
    %c16_i32_30 = arith.constant 16 : i32
    %102 = vector.broadcast %c16_i32_30 : i32 to vector<1x256xi32>
    %103 = arith.cmpi slt, %101, %102 : vector<1x256xi32>
    %104 = arith.andi %99, %103 : vector<1x256xi1>
    %cst_31 = arith.constant 0.000000e+00 : f32
    %105 = vector.broadcast %cst_31 : f32 to vector<4x256xf32>
    %106 = vector.shape_cast %104 : vector<1x256xi1> to vector<1x256xi1>
    %107 = vector.broadcast %106 : vector<1x256xi1> to vector<4x256xi1>
    %108 = arith.select %107, %95, %105 : vector<4x256xi1>, vector<4x256xf32>
    %109 = arith.truncf %108 : vector<4x256xf32> to vector<4x256xbf16>
    %c7_i32 = arith.constant 7 : i32
    %110 = tpu.dynamic_rotate %1 by %c7_i32 dim 1 : vector<4x256xf32>, i32 -> vector<4x256xf32>
    %c-7_i32 = arith.constant -7 : i32
    %111 = vector.broadcast %c-7_i32 : i32 to vector<1x256xi32>
    %112 = arith.addi %18, %111 : vector<1x256xi32>
    %c0_i32_32 = arith.constant 0 : i32
    %113 = vector.broadcast %c0_i32_32 : i32 to vector<1x256xi32>
    %114 = arith.cmpi sge, %112, %113 : vector<1x256xi32>
    %c-7_i32_33 = arith.constant -7 : i32
    %115 = vector.broadcast %c-7_i32_33 : i32 to vector<1x256xi32>
    %116 = arith.addi %18, %115 : vector<1x256xi32>
    %c16_i32_34 = arith.constant 16 : i32
    %117 = vector.broadcast %c16_i32_34 : i32 to vector<1x256xi32>
    %118 = arith.cmpi slt, %116, %117 : vector<1x256xi32>
    %119 = arith.andi %114, %118 : vector<1x256xi1>
    %cst_35 = arith.constant 0.000000e+00 : f32
    %120 = vector.broadcast %cst_35 : f32 to vector<4x256xf32>
    %121 = vector.shape_cast %119 : vector<1x256xi1> to vector<1x256xi1>
    %122 = vector.broadcast %121 : vector<1x256xi1> to vector<4x256xi1>
    %123 = arith.select %122, %110, %120 : vector<4x256xi1>, vector<4x256xf32>
    %124 = arith.truncf %123 : vector<4x256xf32> to vector<4x256xbf16>
    %c249_i32 = arith.constant 249 : i32
    %125 = tpu.dynamic_rotate %1 by %c249_i32 dim 1 : vector<4x256xf32>, i32 -> vector<4x256xf32>
    %c7_i32_36 = arith.constant 7 : i32
    %126 = vector.broadcast %c7_i32_36 : i32 to vector<1x256xi32>
    %127 = arith.addi %18, %126 : vector<1x256xi32>
    %c0_i32_37 = arith.constant 0 : i32
    %128 = vector.broadcast %c0_i32_37 : i32 to vector<1x256xi32>
    %129 = arith.cmpi sge, %127, %128 : vector<1x256xi32>
    %c7_i32_38 = arith.constant 7 : i32
    %130 = vector.broadcast %c7_i32_38 : i32 to vector<1x256xi32>
    %131 = arith.addi %18, %130 : vector<1x256xi32>
    %c16_i32_39 = arith.constant 16 : i32
    %132 = vector.broadcast %c16_i32_39 : i32 to vector<1x256xi32>
    %133 = arith.cmpi slt, %131, %132 : vector<1x256xi32>
    %134 = arith.andi %129, %133 : vector<1x256xi1>
    %cst_40 = arith.constant 0.000000e+00 : f32
    %135 = vector.broadcast %cst_40 : f32 to vector<4x256xf32>
    %136 = vector.shape_cast %134 : vector<1x256xi1> to vector<1x256xi1>
    %137 = vector.broadcast %136 : vector<1x256xi1> to vector<4x256xi1>
    %138 = arith.select %137, %125, %135 : vector<4x256xi1>, vector<4x256xf32>
    %139 = arith.truncf %138 : vector<4x256xf32> to vector<4x256xbf16>
    %c0_41 = arith.constant 0 : index
    %c0_42 = arith.constant 0 : index
    %c0_43 = arith.constant 0 : index
    %140 = vector.load %arg3[%c0_41, %c0_42, %c0_43] : memref<12x8x4xbf16, #tpu.memory_space<vmem>>, vector<1x8x4xbf16>
    %141 = vector.shape_cast %140 : vector<1x8x4xbf16> to vector<8x4xbf16>
    %cst_44 = arith.constant dense<0.000000e+00> : vector<8x256xf32>
    %142 = tpu.matmul %141, %34, %cst_44 {dimension_numbers = #tpu.dot_dimension_numbers<[1], [0], [0], [1], [0, 0, 1, 1], [], []>} : vector<8x4xbf16>, vector<4x256xbf16>, vector<8x256xf32> -> vector<8x256xf32>
    %c1 = arith.constant 1 : index
    %c0_45 = arith.constant 0 : index
    %c0_46 = arith.constant 0 : index
    %143 = vector.load %arg3[%c1, %c0_45, %c0_46] : memref<12x8x4xbf16, #tpu.memory_space<vmem>>, vector<1x8x4xbf16>
    %144 = vector.shape_cast %143 : vector<1x8x4xbf16> to vector<8x4xbf16>
    %cst_47 = arith.constant dense<0.000000e+00> : vector<8x256xf32>
    %145 = tpu.matmul %144, %19, %cst_47 {dimension_numbers = #tpu.dot_dimension_numbers<[1], [0], [0], [1], [0, 0, 1, 1], [], []>} : vector<8x4xbf16>, vector<4x256xbf16>, vector<8x256xf32> -> vector<8x256xf32>
    %146 = arith.addf %142, %145 : vector<8x256xf32>
    %c2 = arith.constant 2 : index
    %c0_48 = arith.constant 0 : index
    %c0_49 = arith.constant 0 : index
    %147 = vector.load %arg3[%c2, %c0_48, %c0_49] : memref<12x8x4xbf16, #tpu.memory_space<vmem>>, vector<1x8x4xbf16>
    %148 = vector.shape_cast %147 : vector<1x8x4xbf16> to vector<8x4xbf16>
    %cst_50 = arith.constant dense<0.000000e+00> : vector<8x256xf32>
    %149 = tpu.matmul %148, %49, %cst_50 {dimension_numbers = #tpu.dot_dimension_numbers<[1], [0], [0], [1], [0, 0, 1, 1], [], []>} : vector<8x4xbf16>, vector<4x256xbf16>, vector<8x256xf32> -> vector<8x256xf32>
    %150 = arith.addf %146, %149 : vector<8x256xf32>
    %c0_51 = arith.constant 0 : index
    %c0_52 = arith.constant 0 : index
    %c0_53 = arith.constant 0 : index
    %151 = vector.load %arg4[%c0_51, %c0_52, %c0_53] : memref<4x8x1xf32, #tpu.memory_space<vmem>>, vector<1x8x1xf32>
    %152 = vector.shape_cast %151 : vector<1x8x1xf32> to vector<8x1xf32>
    %153 = vector.broadcast %152 : vector<8x1xf32> to vector<8x256xf32>
    %154 = arith.addf %150, %153 : vector<8x256xf32>
    %cst_54 = arith.constant 0.000000e+00 : f32
    %155 = vector.broadcast %cst_54 : f32 to vector<8x256xf32>
    %156 = arith.maximumf %154, %155 : vector<8x256xf32>
    %157 = arith.truncf %156 : vector<8x256xf32> to vector<8x256xbf16>
    %c0_55 = arith.constant 0 : index
    %c0_56 = arith.constant 0 : index
    %c0_57 = arith.constant 0 : index
    %158 = vector.load %arg5[%c0_55, %c0_56, %c0_57] : memref<4x8x8xbf16, #tpu.memory_space<vmem>>, vector<1x8x8xbf16>
    %159 = vector.shape_cast %158 : vector<1x8x8xbf16> to vector<8x8xbf16>
    %cst_58 = arith.constant dense<0.000000e+00> : vector<8x256xf32>
    %160 = tpu.matmul %159, %157, %cst_58 {dimension_numbers = #tpu.dot_dimension_numbers<[1], [0], [0], [1], [0, 0, 1, 1], [], []>} : vector<8x8xbf16>, vector<8x256xbf16>, vector<8x256xf32> -> vector<8x256xf32>
    %c3 = arith.constant 3 : index
    %c0_59 = arith.constant 0 : index
    %c0_60 = arith.constant 0 : index
    %161 = vector.load %arg3[%c3, %c0_59, %c0_60] : memref<12x8x4xbf16, #tpu.memory_space<vmem>>, vector<1x8x4xbf16>
    %162 = vector.shape_cast %161 : vector<1x8x4xbf16> to vector<8x4xbf16>
    %cst_61 = arith.constant dense<0.000000e+00> : vector<8x256xf32>
    %163 = tpu.matmul %162, %64, %cst_61 {dimension_numbers = #tpu.dot_dimension_numbers<[1], [0], [0], [1], [0, 0, 1, 1], [], []>} : vector<8x4xbf16>, vector<4x256xbf16>, vector<8x256xf32> -> vector<8x256xf32>
    %c4 = arith.constant 4 : index
    %c0_62 = arith.constant 0 : index
    %c0_63 = arith.constant 0 : index
    %164 = vector.load %arg3[%c4, %c0_62, %c0_63] : memref<12x8x4xbf16, #tpu.memory_space<vmem>>, vector<1x8x4xbf16>
    %165 = vector.shape_cast %164 : vector<1x8x4xbf16> to vector<8x4xbf16>
    %cst_64 = arith.constant dense<0.000000e+00> : vector<8x256xf32>
    %166 = tpu.matmul %165, %19, %cst_64 {dimension_numbers = #tpu.dot_dimension_numbers<[1], [0], [0], [1], [0, 0, 1, 1], [], []>} : vector<8x4xbf16>, vector<4x256xbf16>, vector<8x256xf32> -> vector<8x256xf32>
    %167 = arith.addf %163, %166 : vector<8x256xf32>
    %c5 = arith.constant 5 : index
    %c0_65 = arith.constant 0 : index
    %c0_66 = arith.constant 0 : index
    %168 = vector.load %arg3[%c5, %c0_65, %c0_66] : memref<12x8x4xbf16, #tpu.memory_space<vmem>>, vector<1x8x4xbf16>
    %169 = vector.shape_cast %168 : vector<1x8x4xbf16> to vector<8x4xbf16>
    %cst_67 = arith.constant dense<0.000000e+00> : vector<8x256xf32>
    %170 = tpu.matmul %169, %79, %cst_67 {dimension_numbers = #tpu.dot_dimension_numbers<[1], [0], [0], [1], [0, 0, 1, 1], [], []>} : vector<8x4xbf16>, vector<4x256xbf16>, vector<8x256xf32> -> vector<8x256xf32>
    %171 = arith.addf %167, %170 : vector<8x256xf32>
    %c1_68 = arith.constant 1 : index
    %c0_69 = arith.constant 0 : index
    %c0_70 = arith.constant 0 : index
    %172 = vector.load %arg4[%c1_68, %c0_69, %c0_70] : memref<4x8x1xf32, #tpu.memory_space<vmem>>, vector<1x8x1xf32>
    %173 = vector.shape_cast %172 : vector<1x8x1xf32> to vector<8x1xf32>
    %174 = vector.broadcast %173 : vector<8x1xf32> to vector<8x256xf32>
    %175 = arith.addf %171, %174 : vector<8x256xf32>
    %cst_71 = arith.constant 0.000000e+00 : f32
    %176 = vector.broadcast %cst_71 : f32 to vector<8x256xf32>
    %177 = arith.maximumf %175, %176 : vector<8x256xf32>
    %178 = arith.truncf %177 : vector<8x256xf32> to vector<8x256xbf16>
    %c1_72 = arith.constant 1 : index
    %c0_73 = arith.constant 0 : index
    %c0_74 = arith.constant 0 : index
    %179 = vector.load %arg5[%c1_72, %c0_73, %c0_74] : memref<4x8x8xbf16, #tpu.memory_space<vmem>>, vector<1x8x8xbf16>
    %180 = vector.shape_cast %179 : vector<1x8x8xbf16> to vector<8x8xbf16>
    %cst_75 = arith.constant dense<0.000000e+00> : vector<8x256xf32>
    %181 = tpu.matmul %180, %178, %cst_75 {dimension_numbers = #tpu.dot_dimension_numbers<[1], [0], [0], [1], [0, 0, 1, 1], [], []>} : vector<8x8xbf16>, vector<8x256xbf16>, vector<8x256xf32> -> vector<8x256xf32>
    %182 = arith.addf %160, %181 : vector<8x256xf32>
    %c6 = arith.constant 6 : index
    %c0_76 = arith.constant 0 : index
    %c0_77 = arith.constant 0 : index
    %183 = vector.load %arg3[%c6, %c0_76, %c0_77] : memref<12x8x4xbf16, #tpu.memory_space<vmem>>, vector<1x8x4xbf16>
    %184 = vector.shape_cast %183 : vector<1x8x4xbf16> to vector<8x4xbf16>
    %cst_78 = arith.constant dense<0.000000e+00> : vector<8x256xf32>
    %185 = tpu.matmul %184, %94, %cst_78 {dimension_numbers = #tpu.dot_dimension_numbers<[1], [0], [0], [1], [0, 0, 1, 1], [], []>} : vector<8x4xbf16>, vector<4x256xbf16>, vector<8x256xf32> -> vector<8x256xf32>
    %c7 = arith.constant 7 : index
    %c0_79 = arith.constant 0 : index
    %c0_80 = arith.constant 0 : index
    %186 = vector.load %arg3[%c7, %c0_79, %c0_80] : memref<12x8x4xbf16, #tpu.memory_space<vmem>>, vector<1x8x4xbf16>
    %187 = vector.shape_cast %186 : vector<1x8x4xbf16> to vector<8x4xbf16>
    %cst_81 = arith.constant dense<0.000000e+00> : vector<8x256xf32>
    %188 = tpu.matmul %187, %19, %cst_81 {dimension_numbers = #tpu.dot_dimension_numbers<[1], [0], [0], [1], [0, 0, 1, 1], [], []>} : vector<8x4xbf16>, vector<4x256xbf16>, vector<8x256xf32> -> vector<8x256xf32>
    %189 = arith.addf %185, %188 : vector<8x256xf32>
    %c8 = arith.constant 8 : index
    %c0_82 = arith.constant 0 : index
    %c0_83 = arith.constant 0 : index
    %190 = vector.load %arg3[%c8, %c0_82, %c0_83] : memref<12x8x4xbf16, #tpu.memory_space<vmem>>, vector<1x8x4xbf16>
    %191 = vector.shape_cast %190 : vector<1x8x4xbf16> to vector<8x4xbf16>
    %cst_84 = arith.constant dense<0.000000e+00> : vector<8x256xf32>
    %192 = tpu.matmul %191, %109, %cst_84 {dimension_numbers = #tpu.dot_dimension_numbers<[1], [0], [0], [1], [0, 0, 1, 1], [], []>} : vector<8x4xbf16>, vector<4x256xbf16>, vector<8x256xf32> -> vector<8x256xf32>
    %193 = arith.addf %189, %192 : vector<8x256xf32>
    %c2_85 = arith.constant 2 : index
    %c0_86 = arith.constant 0 : index
    %c0_87 = arith.constant 0 : index
    %194 = vector.load %arg4[%c2_85, %c0_86, %c0_87] : memref<4x8x1xf32, #tpu.memory_space<vmem>>, vector<1x8x1xf32>
    %195 = vector.shape_cast %194 : vector<1x8x1xf32> to vector<8x1xf32>
    %196 = vector.broadcast %195 : vector<8x1xf32> to vector<8x256xf32>
    %197 = arith.addf %193, %196 : vector<8x256xf32>
    %cst_88 = arith.constant 0.000000e+00 : f32
    %198 = vector.broadcast %cst_88 : f32 to vector<8x256xf32>
    %199 = arith.maximumf %197, %198 : vector<8x256xf32>
    %200 = arith.truncf %199 : vector<8x256xf32> to vector<8x256xbf16>
    %c2_89 = arith.constant 2 : index
    %c0_90 = arith.constant 0 : index
    %c0_91 = arith.constant 0 : index
    %201 = vector.load %arg5[%c2_89, %c0_90, %c0_91] : memref<4x8x8xbf16, #tpu.memory_space<vmem>>, vector<1x8x8xbf16>
    %202 = vector.shape_cast %201 : vector<1x8x8xbf16> to vector<8x8xbf16>
    %cst_92 = arith.constant dense<0.000000e+00> : vector<8x256xf32>
    %203 = tpu.matmul %202, %200, %cst_92 {dimension_numbers = #tpu.dot_dimension_numbers<[1], [0], [0], [1], [0, 0, 1, 1], [], []>} : vector<8x8xbf16>, vector<8x256xbf16>, vector<8x256xf32> -> vector<8x256xf32>
    %204 = arith.addf %182, %203 : vector<8x256xf32>
    %c9 = arith.constant 9 : index
    %c0_93 = arith.constant 0 : index
    %c0_94 = arith.constant 0 : index
    %205 = vector.load %arg3[%c9, %c0_93, %c0_94] : memref<12x8x4xbf16, #tpu.memory_space<vmem>>, vector<1x8x4xbf16>
    %206 = vector.shape_cast %205 : vector<1x8x4xbf16> to vector<8x4xbf16>
    %cst_95 = arith.constant dense<0.000000e+00> : vector<8x256xf32>
    %207 = tpu.matmul %206, %124, %cst_95 {dimension_numbers = #tpu.dot_dimension_numbers<[1], [0], [0], [1], [0, 0, 1, 1], [], []>} : vector<8x4xbf16>, vector<4x256xbf16>, vector<8x256xf32> -> vector<8x256xf32>
    %c10 = arith.constant 10 : index
    %c0_96 = arith.constant 0 : index
    %c0_97 = arith.constant 0 : index
    %208 = vector.load %arg3[%c10, %c0_96, %c0_97] : memref<12x8x4xbf16, #tpu.memory_space<vmem>>, vector<1x8x4xbf16>
    %209 = vector.shape_cast %208 : vector<1x8x4xbf16> to vector<8x4xbf16>
    %cst_98 = arith.constant dense<0.000000e+00> : vector<8x256xf32>
    %210 = tpu.matmul %209, %19, %cst_98 {dimension_numbers = #tpu.dot_dimension_numbers<[1], [0], [0], [1], [0, 0, 1, 1], [], []>} : vector<8x4xbf16>, vector<4x256xbf16>, vector<8x256xf32> -> vector<8x256xf32>
    %211 = arith.addf %207, %210 : vector<8x256xf32>
    %c11 = arith.constant 11 : index
    %c0_99 = arith.constant 0 : index
    %c0_100 = arith.constant 0 : index
    %212 = vector.load %arg3[%c11, %c0_99, %c0_100] : memref<12x8x4xbf16, #tpu.memory_space<vmem>>, vector<1x8x4xbf16>
    %213 = vector.shape_cast %212 : vector<1x8x4xbf16> to vector<8x4xbf16>
    %cst_101 = arith.constant dense<0.000000e+00> : vector<8x256xf32>
    %214 = tpu.matmul %213, %139, %cst_101 {dimension_numbers = #tpu.dot_dimension_numbers<[1], [0], [0], [1], [0, 0, 1, 1], [], []>} : vector<8x4xbf16>, vector<4x256xbf16>, vector<8x256xf32> -> vector<8x256xf32>
    %215 = arith.addf %211, %214 : vector<8x256xf32>
    %c3_102 = arith.constant 3 : index
    %c0_103 = arith.constant 0 : index
    %c0_104 = arith.constant 0 : index
    %216 = vector.load %arg4[%c3_102, %c0_103, %c0_104] : memref<4x8x1xf32, #tpu.memory_space<vmem>>, vector<1x8x1xf32>
    %217 = vector.shape_cast %216 : vector<1x8x1xf32> to vector<8x1xf32>
    %218 = vector.broadcast %217 : vector<8x1xf32> to vector<8x256xf32>
    %219 = arith.addf %215, %218 : vector<8x256xf32>
    %cst_105 = arith.constant 0.000000e+00 : f32
    %220 = vector.broadcast %cst_105 : f32 to vector<8x256xf32>
    %221 = arith.maximumf %219, %220 : vector<8x256xf32>
    %222 = arith.truncf %221 : vector<8x256xf32> to vector<8x256xbf16>
    %c3_106 = arith.constant 3 : index
    %c0_107 = arith.constant 0 : index
    %c0_108 = arith.constant 0 : index
    %223 = vector.load %arg5[%c3_106, %c0_107, %c0_108] : memref<4x8x8xbf16, #tpu.memory_space<vmem>>, vector<1x8x8xbf16>
    %224 = vector.shape_cast %223 : vector<1x8x8xbf16> to vector<8x8xbf16>
    %cst_109 = arith.constant dense<0.000000e+00> : vector<8x256xf32>
    %225 = tpu.matmul %224, %222, %cst_109 {dimension_numbers = #tpu.dot_dimension_numbers<[1], [0], [0], [1], [0, 0, 1, 1], [], []>} : vector<8x8xbf16>, vector<8x256xbf16>, vector<8x256xf32> -> vector<8x256xf32>
    %226 = arith.addf %204, %225 : vector<8x256xf32>
    %c0_110 = arith.constant 0 : index
    %c0_111 = arith.constant 0 : index
    %227 = vector.load %arg6[%c0_110, %c0_111] : memref<8x1xf32, #tpu.memory_space<vmem>>, vector<8x1xf32>
    %228 = vector.broadcast %227 : vector<8x1xf32> to vector<8x256xf32>
    %229 = arith.addf %226, %228 : vector<8x256xf32>
    %c0_112 = arith.constant 0 : index
    %c0_113 = arith.constant 0 : index
    %c0_114 = arith.constant 0 : index
    %230 = vector.load %arg7[%c0_112, %c0_113, %c0_114] : memref<1x8x256xf32, #tpu.memory_space<vmem>>, vector<1x8x256xf32>
    %231 = vector.shape_cast %230 : vector<1x8x256xf32> to vector<8x256xf32>
    %232 = vector.shape_cast %229 : vector<8x256xf32> to vector<1x8x256xf32>
    tpu.vector_store %arg7[%c0_112, %c0_113, %c0_114], %232 {strides = array<i32>} : memref<1x8x256xf32, #tpu.memory_space<vmem>>, vector<1x8x256xf32>,
    return
  }
  func.func @transform_0(%arg0: i32, %arg1: i32) -> (i32, i32, i32) {
    %c0_i32 = arith.constant 0 : i32
    %c0_i32_0 = arith.constant 0 : i32
    return %arg0, %c0_i32, %arg1 : i32, i32, i32
  }
  func.func @transform_1(%arg0: i32, %arg1: i32) -> (i32, i32, i32) {
    %c0_i32 = arith.constant 0 : i32
    %c0_i32_0 = arith.constant 0 : i32
    %c0_i32_1 = arith.constant 0 : i32
    %c0_i32_2 = arith.constant 0 : i32
    return %c0_i32, %c0_i32_0, %c0_i32_1 : i32, i32, i32
  }
  func.func @transform_2(%arg0: i32, %arg1: i32) -> (i32, i32, i32) {
    %c0_i32 = arith.constant 0 : i32
    %c0_i32_0 = arith.constant 0 : i32
    %c0_i32_1 = arith.constant 0 : i32
    %c0_i32_2 = arith.constant 0 : i32
    return %c0_i32, %c0_i32_0, %c0_i32_1 : i32, i32, i32
  }
  func.func @transform_3(%arg0: i32, %arg1: i32) -> (i32, i32, i32) {
    %c0_i32 = arith.constant 0 : i32
    %c0_i32_0 = arith.constant 0 : i32
    %c0_i32_1 = arith.constant 0 : i32
    %c0_i32_2 = arith.constant 0 : i32
    return %c0_i32, %c0_i32_0, %c0_i32_1 : i32, i32, i32
  }
  func.func @transform_4(%arg0: i32, %arg1: i32) -> (i32, i32) {
    %c0_i32 = arith.constant 0 : i32
    %c0_i32_0 = arith.constant 0 : i32
    %c0_i32_1 = arith.constant 0 : i32
    return %c0_i32, %c0_i32_0 : i32, i32
  }
  func.func @transform_5(%arg0: i32, %arg1: i32) -> (i32, i32, i32) {
    %c0_i32 = arith.constant 0 : i32
    %c0_i32_0 = arith.constant 0 : i32
    return %arg0, %c0_i32, %arg1 : i32, i32, i32
  }
}

</mosaic_0001>

<bundles_post_ra>
// kernel: tpu_custom_call.1
= control target key start
LH: loop header
LB: loop body
LE: loop exit
PB: predicated region body
PF: predicated region fallthrough
CT: control target
= control target key end

     0   :  { %10 = vsyncpa [#allocation3], 0  ;;  %s2042_s0 = inlined_call_operand.vmem [shape: f32[2,4,256], index: 0, kind: input, shape index: {}]   ;;  %s2043_s1 = inlined_call_operand.vmem [shape: bf16[12,8,4], index: 1, kind: input, shape index: {}]   ;;  %s2044_s2 = inlined_call_operand.vmem [shape: f32[4,8,1], index: 2, kind: input, shape index: {}]   ;;  %s2045_s3 = inlined_call_operand.vmem [shape: bf16[4,8,8], index: 3, kind: input, shape index: {}]   ;;  %s2046_s4 = inlined_call_operand.vmem [shape: f32[8,1], index: 4, kind: input, shape index: {}]   ;;  %s2047_s5 = inlined_call_operand.hbm [shape: f32[2,8,256], index: 5, kind: output, shape index: {}]  }
   0x1   :  { %12 = vsyncpa [#allocation3 + $0x1], 0  ;;  %s1743_s18 = smov 0   ;;  %s1745_s19 = smov 0  }
   0x2   :  { %s1747_s20 = smov 0   ;;  %s1749_s21 = smov 0  }
   0x3   :  { %s1751_s22 = smov 0   ;;  %s1753_s23 = smov 0  }
   0x4 LB: > { %s1454_s24 = sadd.s32 4294967295, %s1701_s23   ;;  %s1455_s25 = sadd.s32 4294967294, %s1701_s23   ;;  %s1701_s23 = sphi %s1753_s23, %s18_s23   ;;  %s1697_s22 = sphi %s1751_s22, %s2054_s22   ;;  %s1693_s21 = sphi %s1749_s21, %s2053_s21   ;;  %s1689_s20 = sphi %s1747_s20, %s2052_s20   ;;  %s1685_s19 = sphi %s1745_s19, %s2051_s19   ;;  %s1681_s18 = sphi %s1743_s18, %s2050_s18  }
   0x5   : > { %s30_s26 = sadd.s32 1, %s1697_s22  ;;  %s151_s27 = sadd.s32 1, %s1689_s20 }
   0x6   : > { %p32_p0 = scmp.ge.s32.totalorder %s30_s26, 2  ;;  %p161_p1 = scmp.ne.s32.totalorder %s1689_s20, %s1685_s19 }
   0x7   : > { %p162_p2 = scmp.eq.s32.totalorder %s1454_s24, 1  ;;  %p167_p3 = scmp.ne.s32.totalorder %s1685_s19, %s1681_s18 }
   0x8   : > { %s2056_s26 = smov (%p32_p0, %s30_s26), 0  ;;  %p168_p5 = scmp.eq.s32.totalorder %s1455_s25, 1 }
   0x9   : > { %p1783_p4 = por %p162_p2, %p161_p1  ;;  %s146_s29 = ssub.s32 %s1697_s22, %s2056_s26 }
   0xa   : > { %p1458_p6 = scmp.ge.s32.totalorder %s1701_s23, 1  ;;  %p149_p7 = scmp.eq.s32.totalorder %s146_s29, 0 }
   0xb   : > { %p1790_p8 = por %p168_p5, %p167_p3  ;;  %p211_p9 = scmp.lt.s32.totalorder %s1701_s23, 3 }
   0xc   : > { %s1796_s6 = scalar_select %p149_p7, %s1689_s20, %s151_s27  }
   0xd   : > { %p212_p10 = pnand %p1458_p6, %p211_p9 }
   0xe   : > { %p244_p11 = scmp.lt.s32.totalorder (!%p212_p10), %s1693_s21, 1  ;;  %s1704_s12 = smov (!%p212_p10), 1  }
   0xf   : > { %215 = sbr.rel (%p212_p10) target bundleno = 1029 (0x405), region = 40  ;;  %s1705_s13 = smov (!%p212_p10), 3  }
  0x10   : > { %s1706_s16 = smov (!%p212_p10), 127   ;;  %s1707_s17 = smov (!%p212_p10), 125  }
  0x11   : > { %s1711_s14 = smov (!%p212_p10), 121   ;;  %s1517_s25 = sshll.u32 (!%p212_p10), %s1693_s21, 8 }
  0x12   : > { %s2002_s9 = scalar_lea.hbm (!%p212_p10), %s2047_s5, %s1517_s25 }
  0x14   : > { %v1703_v0 = vmov 0   ;;  %s245_s7 = scalar_select %p244_p11, %s1693_s21, 1  ;;  %vm479_vm0 = vcmask 1041408   ;;  %v1462_v7 = vld [vmem:[%s2043_s1 + $0x4] sm:$0xf]  ;;  %vm475_vm1 = vcmask 31744   ;;  %v256_v13 = vlaneseq }
  0x15   : > { %518 = vmatprep.mubr.bf16.mxu0 %v1703_v0  ;;  %568 = vmatprep.mubr.bf16.mxu1 %v1703_v0  ;;  %v631_v8 = vld [vmem:[%s2044_s2] sm:$0xff]  ;;  %v1479_v9 = vld [vmem:[%s2044_s2 + $0x8] sm:$0xff]  ;;  %v1494_v10 = vld [vmem:[%s2044_s2 + $0x10] sm:$0xff]  ;;  %s1712_s21 = smov [#allocation2]  }
  0x16   : > { %1603 = vset.pattern.permute.xlu1 %v1703_v0  ;;  %1602 = vset.pattern.permute.xlu0 %v1703_v0  ;;  %s1516_s8 = sshll.u32 %s245_s7, 3  ;;  %s1708_s7 = smov 123   ;;  %v1507_v11 = vld [vmem:[%s2044_s2 + $0x18] sm:$0xff]  ;;  %v1351_v12 = vld [vmem:[%s2046_s4] sm:$0xff]  ;;  %v1835_v14 = vand.u32 127, %v256_v13 }
  0x17   : > { %s251_s11 = scalar_lea.vmem %s2042_s0, %s1516_s8  ;;  %s1709_s8 = smov 5   ;;  %v472_v53 = vld [vmem:[%s2043_s1] sm:$0xf] }
  0x18   : > { %v255_v1 = vld [vmem:[%s251_s11] sm:$0xff]  ;;  %s1710_s11 = smov 7   ;;  %v258_v15 = vadd.s32 128, %v1835_v14  ;;  %v1839_v16 = vand.u32 15, %v1835_v14  ;;  %vm315_vm2 = vcmp.lt.s32.totalorder %v1835_v14, 127  ;;  %vm292_vm3 = vcmp.lt.s32.totalorder %v1835_v14, 1 }
  0x19   : > { %v284_v2 = vcombine.high %v255_v1, %v255_v1  ;;  %v286_v3 = vpack.c.bf16 %v255_v1, %v255_v1  ;;  %vm338_vm5 = vcmp.lt.s32.totalorder %v1835_v14, 3  ;;  %vm361_vm10 = vcmp.lt.s32.totalorder %v1835_v14, 125 }
  0x1a   : > { %v1841_v17 = vand.u32 15, %v258_v15  ;;  %v295_v18 = vadd.s32 4294967295, %v1839_v16  ;;  %v318_v22 = vadd.s32 1, %v1839_v16  ;;  %v341_v23 = vadd.s32 4294967293, %v1839_v16 }
  0x1b   : > { %v1582_v4 = vpack.i.bf16 %v284_v2, %v255_v1  ;;  %v1807_v5 = vpack.c.bf16 %v284_v2, %v284_v2  ;;  %v1810_v6 = vsel %vm479_vm0, %v286_v3, 0  ;;  %v364_v31 = vadd.s32 3, %v1839_v16  ;;  %v1467_v1 = vld [vmem:[%s2043_s1 + $0x8] sm:$0xf] }
  0x1c   : > { %v319_v19 = vadd.s32 1, %v1841_v17  ;;  %v296_v20 = vadd.s32 4294967295, %v1841_v17  ;;  %v342_v21 = vadd.s32 4294967293, %v1841_v17  ;;  %vm297_vm4 = vcmp.ge.s32.totalorder %v295_v18, 0 }
  0x1d   : > { %1583 = vrot.lane.b32.xlu0 %v1582_v4, %s1704_s12  ;;  %1593 = vrot.lane.b32.xlu1 %v1582_v4, %s1705_s13  ;;  %v365_v26 = vadd.s32 3, %v1841_v17  ;;  %vm322_vm9 = vcmp.lt.s32.totalorder %v318_v22, 16  ;;  %vm343_vm11 = vcmp.ge.s32.totalorder %v341_v23, 0  ;;  %vm368_vm13 = vcmp.lt.s32.totalorder %v364_v31, 16  ;;  %s1629_s12 = sshll.u32 %s1712_s21, 4  ;;  %s1630_s12 = int_to_ptr.vmem [resolvable:$false] %s1629_s12 }
  0x1e   : > { %1463 = vmatprep.subr.msk.bf16.mxu0 %vm479_vm0, %v1807_v5  ;;  %vm323_vm6 = vcmp.lt.s32.totalorder %v319_v19, 16  ;;  %vm298_vm7 = vcmp.ge.s32.totalorder %v296_v20, 0  ;;  %vm344_vm8 = vcmp.ge.s32.totalorder %v342_v21, 0  ;;  %v388_v21 = vadd.s32 4294967291, %v1841_v17  ;;  %s1631_s13 = scalar_lea.vmem %s1630_s12, 512 }
  0x1f   : > { %501 = vmatpush1.bf16.msra.mxu0 %v1810_v6  ;;  %vm369_vm12 = vcmp.lt.s32.totalorder %v365_v26, 16  ;;  %vm384_vm14 = vcmp.lt.s32.totalorder %v1835_v14, 5 }
  0x20   : > { %vm390_vm15 = vcmp.ge.s32.totalorder %v388_v21, 0 }
  0x21   : > { %1588 = vrot.lane.b32.xlu0 %v1582_v4, %s1706_s16  ;;  %1598 = vrot.lane.b32.xlu1 %v1582_v4, %s1707_s17  ;;  %s240_s17 = sand.u32 1, %s1685_s19  }
  0x22   : > { %1464 = vmatmul.mubr.msk.bf16.vlgmr.msra.gmra.mxu0 %vm475_vm1, %v1462_v7  ;;  %s1459_s24 = sshll.u32 %s240_s17, 4  ;;  %s1362_s10 = scalar_lea.sflag [#allocation3], %s240_s17 }
  0x23   : > { %620 = vmatprep.mubr.bf16.mxu0 %v1703_v0  ;;  %s242_s27 = scalar_lea.vmem [#allocation2], %s1459_s24 }
  0x24   : > { %s1378_s29 = sshll.u32 %s242_s27, 4  ;;  %s1379_s29 = int_to_ptr.vmem [resolvable:$true] %s1378_s29 }
  0x25   : > { %634 = vperm.xlu1 %1603, %v631_v8   ;;  %800 = vperm.xlu0 %1602, %v1479_v9   ;;  %v1470_v8 = vld [vmem:[%s2043_s1 + $0xc] sm:$0xf]  ;;  %v1476_v9 = vld [vmem:[%s2043_s1 + $0x14] sm:$0xf]  ;;  %p1632_p1 = scmp.lt.s32.totalorder %s1379_s29, %s1630_s12 }
  0x29   : > { %1610 = vrot.lane.b32.xlu0 %v1582_v4, %s1708_s7  ;;  %1605 = vrot.lane.b32.xlu1 %v1582_v4, %s1709_s8 }
  0x2d   : > { %1615 = vrot.lane.b32.xlu0 %v1582_v4, %s1710_s11  ;;  %1069 = vperm.xlu1 %1603, %v1494_v10   ;;  %s1625_s11 = scalar_lea.vmem %s1379_s29, 256 }
  0x2e   : > { %p1626_p12 = scmp.ne.s32.totalorder %s1379_s29, %s1625_s11  ;;  %p1633_p2 = scmp.lt.s32.totalorder %s1631_s13, %s1625_s11 }
  0x30   : > { %p1627_p13 = pnand %p1626_p12, %p1783_p4  ;;  %p1634_p3 = por %p1633_p2, %p1632_p1 }
  0x31   : > { %1288 = vperm.xlu0 %1602, %v1507_v11   ;;  %1620 = vrot.lane.b32.xlu1 %v1582_v4, %s1711_s14  ;;  %v1471_v4 = vld [vmem:[%s2043_s1 + $0x10] sm:$0xf] }
  0x32   : > { %p1628_p0 = pneg %p1627_p13 }
  0x34   : > { %p1635_p5 = pnand %p1634_p3, %p1628_p0 }
  0x35   : > { %1354 = vperm.xlu1 %1603, %v1351_v12  }
  0x8f   : > { %v1584_v24 = vpop.permute.xlu0 %1583  ;;  %v1594_v25 = vpop.permute.xlu1 %1593 }
  0x90   : > { %v1586_v27 = vunpack.i.h.bf16 %v1584_v24  ;;  %v1585_v28 = vunpack.i.l.bf16 %v1584_v24  ;;  %v1596_v29 = vunpack.i.h.bf16 %v1594_v25  ;;  %v1595_v30 = vunpack.i.l.bf16 %v1594_v25 }
  0x91   : > { %v387_v25 = vadd.s32 4294967291, %v1839_v16 }
  0x92   : > { %v293_v32 = vsel %vm292_vm3, %v1585_v28, %v1586_v27  ;;  %v294_v33 = vsel %vm292_vm3, %v1586_v27, %v1585_v28  ;;  %v339_v34 = vsel %vm338_vm5, %v1595_v30, %v1596_v29  ;;  %v340_v35 = vsel %vm338_vm5, %v1596_v29, %v1595_v30 }
  0x93   : > { %v1589_v36 = vpop.permute.xlu0 %1588  ;;  %v308_v37 = vsel %vm298_vm7, %v293_v32, 0.0  ;;  %v307_v38 = vsel %vm297_vm4, %v294_v33, 0.0  ;;  %v354_v39 = vsel %vm344_vm8, %v339_v34, 0.0  ;;  %v1599_v40 = vpop.permute.xlu1 %1598  ;;  %v353_v47 = vsel %vm343_vm11, %v340_v35, 0.0 }
  0x94   : > { %v1591_v41 = vunpack.i.h.bf16 %v1589_v36  ;;  %v1590_v42 = vunpack.i.l.bf16 %v1589_v36  ;;  %v310_v43 = vpack.c.bf16 %v308_v37, %v308_v37  ;;  %v309_v44 = vpack.c.bf16 %v307_v38, %v307_v38 }
  0x95   : > { %v1601_v45 = vunpack.i.h.bf16 %v1599_v40  ;;  %v1600_v46 = vunpack.i.l.bf16 %v1599_v40  ;;  %v356_v51 = vpack.c.bf16 %v354_v39, %v354_v39  ;;  %v355_v60 = vpack.c.bf16 %v353_v47, %v353_v47 }
  0x96   : > { %v316_v48 = vsel %vm315_vm2, %v1590_v42, %v1591_v41  ;;  %v317_v49 = vsel %vm315_vm2, %v1591_v41, %v1590_v42  ;;  %1465 = vmatprep.subr.msk.bf16.mxu1 %vm479_vm0, %v310_v43  ;;  %v531_v50 = vsel %vm479_vm0, %v309_v44, 0  ;;  %vm389_vm2 = vcmp.ge.s32.totalorder %v387_v25, 0  ;;  %v1480_v25 = vld [vmem:[%s2045_s3 + $0x4] sm:$0xf] }
  0x97   : > { %v331_v52 = vsel %vm323_vm6, %v317_v49, 0.0  ;;  %551 = vmatpush1.bf16.msra.mxu1 %v531_v50  ;;  %v330_v54 = vsel %vm322_vm9, %v316_v48, 0.0  ;;  %v362_v55 = vsel %vm361_vm10, %v1600_v46, %v1601_v45  ;;  %v363_v56 = vsel %vm361_vm10, %v1601_v45, %v1600_v46 }
  0x98   : > { %v333_v57 = vpack.c.bf16 %v331_v52, %v331_v52  ;;  %v332_v58 = vpack.c.bf16 %v330_v54, %v330_v54  ;;  %1472 = vmatprep.subr.msk.bf16.mxu1 %vm479_vm0, %v1807_v5  ;;  %v377_v59 = vsel %vm369_vm12, %v363_v56, 0.0  ;;  %v376_v62 = vsel %vm368_vm13, %v362_v55, 0.0 }
  0x99   : > { %v379_v61 = vpack.c.bf16 %v377_v59, %v377_v59  ;;  %v696_v2 = vsel %vm479_vm0, %v355_v60, 0  ;;  %v378_v3 = vpack.c.bf16 %v376_v62, %v376_v62  ;;  %vm815_vm3 = vcmask 1043456  }
  0x9a   : > { %1466 = vmatmul.mubr.msk.bf16.vlgmr.msra.gmra.mxu1 %vm475_vm1, %v472_v53  ;;  %1468 = vmatprep.subr.msk.bf16.mxu0 %vm479_vm0, %v333_v57  ;;  %v583_v63 = vsel %vm479_vm0, %v332_v58, 0  ;;  %vm811_vm4 = vcmask 64512   ;;  %v643_v58 = vld [vmem:[%s2045_s3] sm:$0xf]  ;;  %vm407_vm5 = vcmp.lt.s32.totalorder %v1835_v14, 123  ;;  %vm453_vm8 = vcmp.lt.s32.totalorder %v1835_v14, 121 }
  0x9b   : > { %603 = vmatpush1.bf16.msra.mxu0 %v583_v63  ;;  %666 = vmatpush1.bf16.msra.mxu1 %v1810_v6  ;;  %v748_v7 = vsel %vm479_vm0, %v378_v3, 0  ;;  %v411_v63 = vadd.s32 5, %v1841_v17  ;;  %vm430_vm11 = vcmp.lt.s32.totalorder %v1835_v14, 7 }
  0x9c   : > { %683 = vmatprep.mubr.bf16.mxu1 %v1703_v0  ;;  %1474 = vmatprep.subr.msk.bf16.mxu0 %vm479_vm0, %v356_v51 }
  0x9d   : > { %1477 = vmatprep.subr.msk.bf16.mxu1 %vm479_vm0, %v379_v61  ;;  %vm415_vm6 = vcmp.lt.s32.totalorder %v411_v63, 16  ;;  %v434_v63 = vadd.s32 4294967289, %v1841_v17 }
  0x9e   : > { %1469 = vmatmul.mubr.msk.bf16.vlgmr.msra.gmra.mxu0 %vm475_vm1, %v1467_v1 }
  0x9f   : > { %716 = vmatpush1.bf16.msra.mxu0 %v696_v2  ;;  %733 = vmatprep.mubr.bf16.mxu0 %v1703_v0  ;;  %vm436_vm12 = vcmp.ge.s32.totalorder %v434_v63, 0 }
  0xa0   : > { %v635_v15 = vpop.permute.xlu1 %634  ;;  %v801_v46 = vpop.permute.xlu0 %800 }
  0xa2   : > { %1473 = vmatmul.mubr.msk.bf16.vlgmr.msra.gmra.mxu1 %vm475_vm1, %v1471_v4 }
  0xa3   : > { %768 = vmatpush1.bf16.msra.mxu1 %v748_v7  ;;  %785 = vmatprep.mubr.bf16.mxu1 %v1703_v0 }
  0xa4   : > { %v1606_v19 = vpop.permute.xlu1 %1605  ;;  %v1611_v59 = vpop.permute.xlu0 %1610 }
  0xa5   : > { %v1608_v22 = vunpack.i.h.bf16 %v1606_v19  ;;  %v1607_v23 = vunpack.i.l.bf16 %v1606_v19  ;;  %v1613_v3 = vunpack.i.h.bf16 %v1611_v59  ;;  %v1612_v4 = vunpack.i.l.bf16 %v1611_v59 }
  0xa6   : > { %1475 = vmatmul.mubr.msk.bf16.vlgmr.msra.gmra.mxu0 %vm475_vm1, %v1470_v8  ;;  %v410_v19 = vadd.s32 5, %v1839_v16 }
  0xa7   : > { %854 = vmatprep.mubr.bf16.mxu0 %v1703_v0  ;;  %v385_v32 = vsel %vm384_vm14, %v1607_v23, %v1608_v22  ;;  %v386_v35 = vsel %vm384_vm14, %v1608_v22, %v1607_v23  ;;  %v408_v23 = vsel %vm407_vm5, %v1612_v4, %v1613_v3 }
  0xa8   : > { %v400_v42 = vsel %vm390_vm15, %v385_v32, 0.0  ;;  %v399_v43 = vsel %vm389_vm2, %v386_v35, 0.0  ;;  %vm414_vm7 = vcmp.lt.s32.totalorder %v410_v19, 16  ;;  %v1070_v32 = vpop.permute.xlu1 %1069 }
  0xa9   : > { %v402_v50 = vpack.c.bf16 %v400_v42, %v400_v42  ;;  %v401_v51 = vpack.c.bf16 %v399_v43, %v399_v43 }
  0xaa   : > { %1478 = vmatmul.mubr.msk.bf16.vlgmr.msra.gmra.mxu1 %vm475_vm1, %v1476_v9 }
  0xab   : > { %904 = vmatprep.mubr.bf16.mxu1 %v1703_v0  ;;  %v965_v62 = vsel %vm479_vm0, %v401_v51, 0 }
  0xe2   : > { %v520_v10 = vpop.f32.mrf.mxu0 }
  0xe4   : > { %v522_v11 = vpop.f32.mrf.mxu0 }
  0xe6   : > { %v524_v12 = vpop.f32.mrf.mxu0 }
  0xe8   : > { %v525_v13 = vpop.f32.mrf.mxu0 }
  0xe9   : > { %v409_v13 = vsel %vm407_vm5, %v1613_v3, %v1612_v4 }
  0xea   : > { %v423_v22 = vsel %vm415_vm6, %v409_v13, 0.0 }
 0x15a   : > { %v570_v18 = vpop.f32.mrf.mxu1 }
 0x15b   : > { %v571_v24 = vadd.f32 %v570_v18, %v520_v10 }
 0x15c   : > { %v572_v20 = vpop.f32.mrf.mxu1 }
 0x15d   : > { %v573_v28 = vadd.f32 %v572_v20, %v522_v11  ;;  %v1485_v20 = vld [vmem:[%s2043_s1 + $0x18] sm:$0xf] }
 0x15e   : > { %v574_v26 = vpop.f32.mrf.mxu1  ;;  %v622_v27 = vpop.f32.mrf.mxu0 }
 0x15f   : > { %v629_v29 = vadd.f32 %v622_v27, %v571_v24  ;;  %v425_v26 = vpack.c.bf16 %v423_v22, %v423_v22  ;;  %v422_v27 = vsel %vm414_vm7, %v408_v23, 0.0 }
 0x160   : > { %v575_v30 = vpop.f32.mrf.mxu1  ;;  %v624_v31 = vpop.f32.mrf.mxu0 }
 0x161   : > { %v637_v33 = vadd.f32 %v635_v15, %v629_v29  ;;  %v630_v34 = vadd.f32 %v624_v31, %v573_v28  ;;  %v424_v28 = vpack.c.bf16 %v422_v27, %v422_v27  ;;  %v1486_v29 = vld [vmem:[%s2043_s1 + $0x1c] sm:$0xf]  ;;  %v1491_v31 = vld [vmem:[%s2043_s1 + $0x20] sm:$0xf] }
 0x162   : > { %v626_v36 = vpop.f32.mrf.mxu0  ;;  %v685_v37 = vpop.f32.mrf.mxu1 }
 0x163   : > { %v639_v38 = vmax.f32 %v637_v33, 0.0  ;;  %v638_v39 = vadd.f32 %v635_v15, %v630_v34  ;;  %v1017_v30 = vsel %vm479_vm0, %v424_v28, 0  ;;  %v1621_v33 = vpop.permute.xlu1 %1620  ;;  %v457_v34 = vadd.s32 7, %v1841_v17  ;;  %v1495_v28 = vld [vmem:[%s2045_s3 + $0x8] sm:$0xf] }
 0x164   : > { %v627_v40 = vpop.f32.mrf.mxu0  ;;  %v687_v41 = vpop.f32.mrf.mxu1  ;;  %v1623_v35 = vunpack.i.h.bf16 %v1621_v33  ;;  %v1622_v36 = vunpack.i.l.bf16 %v1621_v33 }
 0x165   : > { %v641_v44 = vpack.c.bf16 %v639_v38, %v639_v38  ;;  %v640_v45 = vmax.f32 %v638_v39, 0.0  ;;  %vm461_vm9 = vcmp.lt.s32.totalorder %v457_v34, 16  ;;  %v456_v38 = vadd.s32 7, %v1839_v16 }
 0x166   : > { %v689_v47 = vpop.f32.mrf.mxu1  ;;  %v735_v48 = vpop.f32.mrf.mxu0 }
 0x167   : > { %v642_v49 = vpack.c.bf16 %v640_v45, %v640_v45  ;;  %v736_v54 = vadd.f32 %v735_v48, %v685_v37  ;;  %v867_v55 = vsel %vm815_vm3, %v641_v44, 0  ;;  %v454_v37 = vsel %vm453_vm8, %v1622_v36, %v1623_v35  ;;  %v1504_v44 = vld [vmem:[%s2043_s1 + $0x2c] sm:$0xf] }
 0x168   : > { %v690_v52 = vpop.f32.mrf.mxu1  ;;  %v737_v53 = vpop.f32.mrf.mxu0  ;;  %vm460_vm10 = vcmp.lt.s32.totalorder %v456_v38, 16 }
 0x169   : > { %1483 = vmatprep.subr.msk.bf16.mxu1 %vm815_vm3, %v642_v49  ;;  %v738_v60 = vadd.f32 %v737_v53, %v687_v41  ;;  %v468_v40 = vsel %vm460_vm10, %v454_v37, 0.0 }
 0x16a   : > { %v739_v56 = vpop.f32.mrf.mxu0  ;;  %v787_v57 = vpop.f32.mrf.mxu1  ;;  %887 = vmatpush1.bf16.msra.mxu1 %v867_v55  ;;  %v470_v42 = vpack.c.bf16 %v468_v40, %v468_v40 }
 0x16b   : > { %v794_v61 = vadd.f32 %v787_v57, %v736_v54  ;;  %1489 = vmatprep.subr.msk.bf16.mxu1 %vm479_vm0, %v402_v50 }
 0x16c   : > { %v740_v1 = vpop.f32.mrf.mxu0  ;;  %v789_v2 = vpop.f32.mrf.mxu1  ;;  %v1236_v43 = vsel %vm479_vm0, %v470_v42, 0 }
 0x16d   : > { %v803_v7 = vadd.f32 %v801_v46, %v794_v61  ;;  %v795_v8 = vadd.f32 %v789_v2, %v738_v60  ;;  %1484 = vmatmul.mubr.msk.bf16.vlgmr.msra.gmra.mxu1 %vm811_vm4, %v643_v58 }
 0x16e   : > { %v791_v9 = vpop.f32.mrf.mxu1  ;;  %985 = vmatpush1.bf16.msra.mxu1 %v965_v62  ;;  %1002 = vmatprep.mubr.bf16.mxu1 %v1703_v0  ;;  %v1616_v62 = vpop.permute.xlu0 %1615 }
 0x16f   : > { %v805_v10 = vmax.f32 %v803_v7, 0.0  ;;  %v804_v11 = vadd.f32 %v801_v46, %v795_v8  ;;  %v1618_v1 = vunpack.i.h.bf16 %v1616_v62  ;;  %v1617_v2 = vunpack.i.l.bf16 %v1616_v62 }
 0x170   : > { %v792_v12 = vpop.f32.mrf.mxu1  ;;  %v433_v7 = vadd.s32 4294967289, %v1839_v16 }
 0x171   : > { %v807_v15 = vpack.c.bf16 %v805_v10, %v805_v10  ;;  %v806_v18 = vmax.f32 %v804_v11, 0.0  ;;  %v431_v11 = vsel %vm430_vm11, %v1617_v2, %v1618_v1  ;;  %v432_v13 = vsel %vm430_vm11, %v1618_v1, %v1617_v2 }
 0x172   : > { %vm435_vm13 = vcmp.ge.s32.totalorder %v433_v7, 0 }
 0x173   : > { %v808_v21 = vpack.c.bf16 %v806_v18, %v806_v18  ;;  %v817_v24 = vsel %vm815_vm3, %v807_v15, 0  ;;  %v445_v23 = vsel %vm435_vm13, %v432_v13, 0.0 }
 0x175   : > { %1481 = vmatprep.subr.msk.bf16.mxu0 %vm815_vm3, %v808_v21  ;;  %1490 = vmatmul.mubr.msk.bf16.vlgmr.msra.gmra.mxu1 %vm475_vm1, %v1485_v20  ;;  %v446_v21 = vsel %vm436_vm12, %v431_v11, 0.0 }
 0x176   : > { %837 = vmatpush1.bf16.msra.mxu0 %v817_v24  ;;  %1121 = vmatprep.mubr.bf16.mxu1 %v1703_v0  ;;  %v448_v16 = vpack.c.bf16 %v446_v21, %v446_v21 }
 0x177   : > { %1487 = vmatprep.subr.msk.bf16.mxu0 %vm479_vm0, %v1807_v5 }
 0x179   : > { %1482 = vmatmul.mubr.msk.bf16.vlgmr.msra.gmra.mxu0 %vm811_vm4, %v1480_v25 }
 0x17a   : > { %935 = vmatpush1.bf16.msra.mxu0 %v1810_v6  ;;  %952 = vmatprep.mubr.bf16.mxu0 %v1703_v0 }
 0x17b   : > { %1492 = vmatprep.subr.msk.bf16.mxu0 %vm479_vm0, %v425_v26  ;;  %v447_v26 = vpack.c.bf16 %v445_v23, %v445_v23 }
 0x181   : > { %1488 = vmatmul.mubr.msk.bf16.vlgmr.msra.gmra.mxu0 %vm475_vm1, %v1486_v29  ;;  %v1184_v29 = vsel %vm479_vm0, %v447_v26, 0 }
 0x182   : > { %1037 = vmatpush1.bf16.msra.mxu0 %v1017_v30  ;;  %1054 = vmatprep.mubr.bf16.mxu0 %v1703_v0  ;;  %v1498_v30 = vld [vmem:[%s2043_s1 + $0x24] sm:$0xf] }
 0x183   : > { %1500 = vmatprep.subr.msk.bf16.mxu0 %vm479_vm0, %v1807_v5  ;;  %v455_v5 = vsel %vm453_vm8, %v1623_v35, %v1622_v36 }
 0x184   : > { %v469_v39 = vsel %vm461_vm9, %v455_v5, 0.0 }
 0x185   : > { %v471_v41 = vpack.c.bf16 %v469_v39, %v469_v39 }
 0x189   : > { %1493 = vmatmul.mubr.msk.bf16.vlgmr.msra.gmra.mxu0 %vm475_vm1, %v1491_v31 }
 0x18a   : > { %1154 = vmatpush1.bf16.msra.mxu0 %v1810_v6  ;;  %1171 = vmatprep.mubr.bf16.mxu0 %v1703_v0  ;;  %v1499_v6 = vld [vmem:[%s2043_s1 + $0x28] sm:$0xf] }
 0x18b   : > { %1505 = vmatprep.subr.msk.bf16.mxu0 %vm479_vm0, %v471_v41 }
 0x191   : > { %1501 = vmatmul.mubr.msk.bf16.vlgmr.msra.gmra.mxu0 %vm475_vm1, %v1499_v6 }
 0x192   : > { %1273 = vmatprep.mubr.bf16.mxu0 %v1703_v0  ;;  %1256 = vmatpush1.bf16.msra.mxu0 %v1236_v43 }
 0x199   : > { %1506 = vmatmul.mubr.msk.bf16.vlgmr.msra.gmra.mxu0 %vm475_vm1, %v1504_v44 }
 0x22d   : > { %v906_v45 = vpop.f32.mrf.mxu1 }
 0x22f   : > { %v908_v46 = vpop.f32.mrf.mxu1 }
 0x231   : > { %v910_v47 = vpop.f32.mrf.mxu1 }
 0x233   : > { %v911_v48 = vpop.f32.mrf.mxu1 }
 0x235   : > { %v1004_v49 = vpop.f32.mrf.mxu1 }
 0x237   : > { %v1006_v50 = vpop.f32.mrf.mxu1 }
 0x239   : > { %v856_v51 = vpop.f32.mrf.mxu0  ;;  %v1008_v52 = vpop.f32.mrf.mxu1 }
 0x23a   : > { %v907_v53 = vadd.f32 %v906_v45, %v856_v51 }
 0x23b   : > { %v858_v54 = vpop.f32.mrf.mxu0  ;;  %v1009_v55 = vpop.f32.mrf.mxu1 }
 0x23c   : > { %v909_v56 = vadd.f32 %v908_v46, %v858_v54 }
 0x23d   : > { %v860_v57 = vpop.f32.mrf.mxu0 }
 0x23f   : > { %v861_v58 = vpop.f32.mrf.mxu0 }
 0x240   : > { %v1508_v58 = vld [vmem:[%s2045_s3 + $0xc] sm:$0xf] }
 0x241   : > { %v954_v59 = vpop.f32.mrf.mxu0 }
 0x242   : > { %v1005_v4 = vadd.f32 %v1004_v49, %v954_v59 }
 0x243   : > { %v956_v60 = vpop.f32.mrf.mxu0 }
 0x244   : > { %v1007_v9 = vadd.f32 %v1006_v50, %v956_v60 }
 0x245   : > { %v958_v61 = vpop.f32.mrf.mxu0 }
 0x246   : > { %v1355_v61 = vpop.permute.xlu1 %1354 }
 0x247   : > { %v959_v3 = vpop.f32.mrf.mxu0 }
 0x249   : > { %v1056_v8 = vpop.f32.mrf.mxu0 }
 0x24a   : > { %v1063_v10 = vadd.f32 %v1056_v8, %v1005_v4 }
 0x24b   : > { %v1058_v12 = vpop.f32.mrf.mxu0 }
 0x24c   : > { %v1072_v15 = vadd.f32 %v1070_v32, %v1063_v10  ;;  %v1064_v18 = vadd.f32 %v1058_v12, %v1007_v9 }
 0x24d   : > { %v1060_v19 = vpop.f32.mrf.mxu0 }
 0x24e   : > { %v1074_v17 = vmax.f32 %v1072_v15, 0.0  ;;  %v1073_v20 = vadd.f32 %v1070_v32, %v1064_v18 }
 0x24f   : > { %v1061_v22 = vpop.f32.mrf.mxu0 }
 0x250   : > { %v1076_v14 = vpack.c.bf16 %v1074_v17, %v1074_v17  ;;  %v1075_v24 = vmax.f32 %v1073_v20, 0.0 }
 0x251   : > { %v1173_v31 = vpop.f32.mrf.mxu0 }
 0x252   : > { %v1077_v25 = vpack.c.bf16 %v1075_v24, %v1075_v24  ;;  %v1084_v27 = vsel %vm815_vm3, %v1076_v14, 0 }
 0x253   : > { %v1175_v32 = vpop.f32.mrf.mxu0 }
 0x254   : > { %1496 = vmatprep.subr.msk.bf16.mxu1 %vm815_vm3, %v1077_v25 }
 0x255   : > { %1104 = vmatpush1.bf16.msra.mxu1 %v1084_v27  ;;  %v1177_v33 = vpop.f32.mrf.mxu0 }
 0x256   : > { %1502 = vmatprep.subr.msk.bf16.mxu1 %vm479_vm0, %v448_v16 }
 0x257   : > { %v1178_v34 = vpop.f32.mrf.mxu0 }
 0x258   : > { %1497 = vmatmul.mubr.msk.bf16.vlgmr.msra.gmra.mxu1 %vm811_vm4, %v1495_v28 }
 0x259   : > { %1204 = vmatpush1.bf16.msra.mxu1 %v1184_v29  ;;  %1221 = vmatprep.mubr.bf16.mxu1 %v1703_v0  ;;  %v1275_v35 = vpop.f32.mrf.mxu0 }
 0x25b   : > { %v1277_v36 = vpop.f32.mrf.mxu0 }
 0x25d   : > { %v1279_v5 = vpop.f32.mrf.mxu0 }
 0x25f   : > { %v1280_v37 = vpop.f32.mrf.mxu0 }
 0x260   : > { %1503 = vmatmul.mubr.msk.bf16.vlgmr.msra.gmra.mxu1 %vm475_vm1, %v1498_v30 }
 0x261   : > { %1340 = vmatprep.mubr.bf16.mxu1 %v1703_v0  ;;  %v1289_v0 = vpop.permute.xlu0 %1288 }
 0x318   : > { %v1123_v38 = vpop.f32.mrf.mxu1 }
 0x319   : > { %v1130_v39 = vadd.f32 %v1123_v38, %v907_v53 }
 0x31a   : > { %v1125_v6 = vpop.f32.mrf.mxu1 }
 0x31b   : > { %v1131_v40 = vadd.f32 %v1125_v6, %v909_v56 }
 0x31c   : > { %v1127_v41 = vpop.f32.mrf.mxu1 }
 0x31e   : > { %v1128_v42 = vpop.f32.mrf.mxu1 }
 0x320   : > { %v1223_v43 = vpop.f32.mrf.mxu1 }
 0x321   : > { %v1224_v44 = vadd.f32 %v1223_v43, %v1173_v31 }
 0x322   : > { %v1225_v45 = vpop.f32.mrf.mxu1 }
 0x323   : > { %v1282_v46 = vadd.f32 %v1275_v35, %v1224_v44  ;;  %v1226_v47 = vadd.f32 %v1225_v45, %v1175_v32 }
 0x324   : > { %v1227_v48 = vpop.f32.mrf.mxu1 }
 0x325   : > { %v1291_v49 = vadd.f32 %v1289_v0, %v1282_v46  ;;  %v1283_v50 = vadd.f32 %v1277_v36, %v1226_v47 }
 0x326   : > { %v1228_v51 = vpop.f32.mrf.mxu1 }
 0x327   : > { %v1293_v52 = vmax.f32 %v1291_v49, 0.0  ;;  %v1292_v54 = vadd.f32 %v1289_v0, %v1283_v50 }
 0x329   : > { %v1294_v55 = vmax.f32 %v1292_v54, 0.0  ;;  %v1295_v53 = vpack.c.bf16 %v1293_v52, %v1293_v52 }
 0x32b   : > { %v1296_v57 = vpack.c.bf16 %v1294_v55, %v1294_v55  ;;  %v1303_v56 = vsel %vm815_vm3, %v1295_v53, 0 }
 0x32d   : > { %1509 = vmatprep.subr.msk.bf16.mxu1 %vm815_vm3, %v1296_v57 }
 0x32e   : > { %1323 = vmatpush1.bf16.msra.mxu1 %v1303_v56 }
 0x331   : > { %1510 = vmatmul.mubr.msk.bf16.vlgmr.msra.gmra.mxu1 %vm811_vm4, %v1508_v58 }
 0x3f1   : > { %v1342_v59 = vpop.f32.mrf.mxu1 }
 0x3f2   : > { %v1349_v60 = vadd.f32 %v1342_v59, %v1130_v39 }
 0x3f3   : > { %v1344_v62 = vpop.f32.mrf.mxu1 }
 0x3f4   : > { %v1357_v63 = vadd.f32 %v1355_v61, %v1349_v60  ;;  %v1350_v1 = vadd.f32 %v1344_v62, %v1131_v40 }
 0x3f5   : > { %v1346_v2 = vpop.f32.mrf.mxu1 }
 0x3f6   : > { %1359 = vst [vmem:[%s242_s27] sm:$0xff] %v1357_v63  ;;  %v1358_v3 = vadd.f32 %v1355_v61, %v1350_v1 }
 0x3f7   : > { %v1347_v4 = vpop.f32.mrf.mxu1 }
 0x3f8   : > { %1360 = vst [vmem:[%s242_s27 + $0x8] sm:$0xff] %v1358_v3 }
 0x3f9   : > { %1638 = shalt.err (!%p1635_p5)
}
 0x3fa   : > { %s1639_s14 = scalar_lea.hbm %s2002_s9, 256  ;;  %s1643_s17 = scalar_lea.hbm %s2047_s5, 512 }
 0x3fb   : > { %p1640_p6 = scmp.ne.s32.totalorder %s2002_s9, %s1639_s14  ;;  %p1644_p10 = scmp.lt.s32.totalorder %s2002_s9, %s2047_s5 }
 0x3fc   : > { %p1645_p11 = scmp.lt.s32.totalorder %s1643_s17, %s1639_s14 }
 0x3fd   : > { %p1641_p7 = pnand %p1640_p6, %p1783_p4 }
 0x3fe   : > { %p1646_p12 = por %p1645_p11, %p1644_p10 }
 0x3ff   : > { %p1642_p9 = pneg %p1641_p7 }
 0x401   : > { %p1647_p13 = pnand %p1646_p12, %p1642_p9 }
 0x403   : > { %1650 = shalt.err (!%p1647_p13)
}
 0x404   : > { %1518 = dma.vmem_to_hbm [thread:$0]  (%p1783_p4), %s1379_s29, 256, %s2002_s9, %s1362_s10  }
 0x405 PF: > { %p1524_p0 = scmp.ge.s32.totalorder %s1701_s23, 2  ;;  %s1390_s27 = sand.u32 1, %s1681_s18  }
 0x406   : > { %s1391_s7 = scalar_lea.sflag [#allocation3], %s1390_s27 }
 0x407   : > { %p1521_p1 = pnand %p1524_p0, %p1790_p8 }
 0x409   : > { %p1522_p2 = pneg %p1521_p1 }
 0x40b   : > { %1676 = dma.done.wait (%p1522_p2), %s1391_s7, 256  }
 0x40c   : > { %1678 = vsyncadd (%p1522_p2), %s1391_s7, 4294967040  ;;  %s18_s23 = sadd.s32 1, %s1701_s23   ;;  %s2050_s18 = smov %s1685_s19 }
 0x40d   : > { %p15_p3 = scmp.ge.s32.totalorder %s18_s23, 4   ;;  %s2051_s19 = smov %s1689_s20 }
 0x40e   : > { %s2052_s20 = smov %s1796_s6  ;;  %s2053_s21 = smov %s1697_s22 }
 0x40f   : > { %s2054_s22 = smov %s2056_s26  ;;  %17 = sbr.rel (!%p15_p3) target bundleno = 4 (0x4), region = 92 }
 0x414   :  { %1396 = vsyncpa [#allocation3], 1 }
 0x415   :  { %1398 = vsyncpa [#allocation3 + $0x1], 1 }

</bundles_post_ra>
